<compile_context>
chip_gen: v7x
topology: tpu7x:2x2x1
jax: 0.10.0
libtpu: 0.0.40
codegen_flags: <defaults>
</compile_context>

<pallas_src>
import jax
import jax.numpy as jnp
from jax.experimental import pallas as pl
from jax.experimental.pallas import tpu as pltpu

BN_EPS = 1e-5


def _round_up(x, m):
    return ((x + m - 1) // m) * m


def regression_nn_kernel(x_ref, w1t_ref, b1t_ref, w2t_ref, b2t_ref, w3t_ref,
                         b3_ref, o_ref):
    """One batch tile, batch on the lane axis.

    h1^T = relu(W1^T x^T + b1), h2^T = relu(W2f^T h1^T + b2f),
    out^T = w3f . h2^T + b3f  -> lane-dense [1, tile_b] store.
    BatchNorm1d (eval, running stats) is pre-folded into (W2f,b2f)/(w3f,b3f);
    Dropout is identity in eval.
    """
    xb = x_ref[...].astype(jnp.bfloat16)                        # [TB, D]; no-op if bf16 in

    # h1^T = W1^T @ x^T expressed as a trans-B matmul (contract both minor dims).
    h1 = jax.lax.dot_general(
        w1t_ref[...], xb, (((1,), (1,)), ((), ())),
        preferred_element_type=jnp.float32)                     # [H1, TB] f32
    h1 = jnp.maximum(h1 + b1t_ref[...], 0.0)

    h2 = jnp.dot(w2t_ref[...], h1.astype(jnp.bfloat16),
                 preferred_element_type=jnp.float32)            # [H2, TB] f32
    h2 = jnp.maximum(h2 + b2t_ref[...], 0.0)

    # Final Linear(H2, 1): VPU multiply + sublane reduction -> lane-dense row.
    out = jnp.sum(h2 * w3t_ref[...], axis=0, keepdims=True) + b3_ref[...]
    o_ref[...] = out.astype(o_ref.dtype)                        # [1, TB]

    # TODO(synk): training-mode Dropout (pltpu.prng_random_bits mask) and
    # batch-statistics BatchNorm are not implemented; inference semantics only.


def fold_params(p):
    """Fold eval-mode BatchNorm1d into the following Linear; emit transposed
    (batch-on-lanes) kernel weights, bf16 for the MXU operands.

    BN(h) = h*s + t with s = gamma * rsqrt(var + eps), t = beta - mean*s, so
    BN1 folds into (w2, b2) and BN2 folds into (w3, b3).
    """
    s1 = p["g1"] * jax.lax.rsqrt(p["v1"] + BN_EPS)              # [1, H1]
    t1 = p["beta1"] - p["m1"] * s1
    s2 = p["g2"] * jax.lax.rsqrt(p["v2"] + BN_EPS)              # [1, H2]
    t2 = p["beta2"] - p["m2"] * s2

    w2f = p["w2"] * s1.reshape(-1, 1)                           # [H1, H2]
    b2f = p["b2"] + t1 @ p["w2"]                                # [1, H2]
    w3f = p["w3"] * s2.reshape(-1, 1)                           # [H2, 1]
    b3f = p["b3"] + t2 @ p["w3"]                                # [1, 1]

    return dict(
        w1t=p["w1"].T.astype(jnp.bfloat16),                     # [H1, D]
        b1t=p["b1"].reshape(-1, 1).astype(jnp.float32),         # [H1, 1]
        w2t=w2f.T.astype(jnp.bfloat16),                         # [H2, H1]
        b2t=b2f.reshape(-1, 1).astype(jnp.float32),             # [H2, 1]
        w3t=w3f.astype(jnp.float32),                            # [H2, 1]
        b3=b3f.astype(jnp.float32),                             # [1, 1]
    )


def _choose_tile_b(B, max_tile_b):
    if B < 256:
        # Single grid step; block dims == full array dims (no alignment needed,
        # no partial blocks at all).
        return B
    # >= 2 tiles so both v7x TensorCores get work; as large as possible to
    # amortize per-step overhead; multiple of 128 (output lane dim / sublanes).
    return min(max_tile_b, _round_up(pl.cdiv(B, 2), 128))


def regression_nn_forward(x, folded, *, max_tile_b=8192):
    """x: [B, input_dim] float32 (or bfloat16). folded: output of fold_params()."""
    B, D = x.shape
    H1 = folded["w1t"].shape[0]
    H2 = folded["w2t"].shape[0]

    tile_b = _choose_tile_b(B, max_tile_b)
    num_tiles = pl.cdiv(B, tile_b)
    padded_b = num_tiles * tile_b        # output width; >= B, no jnp.pad on x

    def resident(shape):
        # Full-array block, same block index every step -> weights/biases stay
        # VMEM-resident across the whole grid (DMA'd once).
        return pl.BlockSpec(shape, lambda i: (0, 0))

    w_bytes = sum(int(v.size) * v.dtype.itemsize for v in folded.values())
    cost = pl.CostEstimate(
        flops=2 * B * (D * H1 + H1 * H2 + H2),
        transcendentals=0,
        bytes_accessed=B * D * x.dtype.itemsize + B * 4 + w_bytes,
    )

    out = pl.pallas_call(
        regression_nn_kernel,
        out_shape=jax.ShapeDtypeStruct((1, padded_b), jnp.float32),
        grid=(num_tiles,),
        in_specs=[
            pl.BlockSpec((tile_b, D), lambda i: (i, 0)),  # x: streamed batch tiles
            resident((H1, D)),                            # W1^T (bf16)
            resident((H1, 1)),                            # b1 column
            resident((H2, H1)),                           # W2f^T (BN1-folded, bf16)
            resident((H2, 1)),                            # b2f column
            resident((H2, 1)),                            # w3f column (BN2-folded)
            resident((1, 1)),                             # b3f
        ],
        out_specs=pl.BlockSpec((1, tile_b), lambda i: (0, i)),  # lane-dense rows
        compiler_params=pltpu.CompilerParams(
            dimension_semantics=("parallel",),            # megacore-shard batch tiles
            vmem_limit_bytes=32 * 1024 * 1024,
        ),
        cost_estimate=cost,
    )(x, folded["w1t"], folded["b1t"], folded["w2t"], folded["b2t"],
      folded["w3t"], folded["b3"])
    return out.reshape(-1)[:B].reshape(B, 1)


def init_params(key, input_dim, h1=32, h2=16):
    """Deterministic synthetic parameter init (PyTorch-like uniform ranges)."""
    ks = jax.random.split(key, 10)

    def lin(kw, kb, fan_in, fan_out):
        bound = 1.0 / jnp.sqrt(fan_in)
        w = jax.random.uniform(kw, (fan_in, fan_out), jnp.float32, -bound, bound)
        b = jax.random.uniform(kb, (1, fan_out), jnp.float32, -bound, bound)
        return w, b

    w1, b1 = lin(ks[0], ks[1], input_dim, h1)
    w2, b2 = lin(ks[2], ks[3], h1, h2)
    w3, b3 = lin(ks[4], ks[5], h2, 1)

    # BatchNorm: gamma=1, beta=0; perturb running stats so the affine path is
    # actually exercised.
    m1 = 0.05 * jax.random.normal(ks[6], (1, h1), jnp.float32)
    v1 = 1.0 + 0.1 * jax.random.uniform(ks[7], (1, h1), jnp.float32)
    m2 = 0.05 * jax.random.normal(ks[8], (1, h2), jnp.float32)
    v2 = 1.0 + 0.1 * jax.random.uniform(ks[9], (1, h2), jnp.float32)

    return dict(
        w1=w1, b1=b1, g1=jnp.ones((1, h1), jnp.float32),
        beta1=jnp.zeros((1, h1), jnp.float32), m1=m1, v1=v1,
        w2=w2, b2=b2, g2=jnp.ones((1, h2), jnp.float32),
        beta2=jnp.zeros((1, h2), jnp.float32), m2=m2, v2=v2,
        w3=w3, b3=b3,
    )


def reference_forward(x, p):
    """Pure-JAX f32 reference of the PyTorch module (eval-mode semantics)."""
    h1 = jnp.maximum(x @ p["w1"] + p["b1"], 0.0)
    h1 = (h1 - p["m1"]) / jnp.sqrt(p["v1"] + BN_EPS) * p["g1"] + p["beta1"]
    h2 = jnp.maximum(h1 @ p["w2"] + p["b2"], 0.0)
    h2 = (h2 - p["m2"]) / jnp.sqrt(p["v2"] + BN_EPS) * p["g2"] + p["beta2"]
    return h2 @ p["w3"] + p["b3"]


def reference_forward_folded(x, f):
    """Reference with the same numerics/orientation as the kernel."""
    xb = x.astype(jnp.bfloat16)
    h1 = jax.lax.dot_general(f["w1t"], xb, (((1,), (1,)), ((), ())),
                             preferred_element_type=jnp.float32)
    h1 = jnp.maximum(h1 + f["b1t"], 0.0)
    h2 = jnp.dot(f["w2t"], h1.astype(jnp.bfloat16),
                 preferred_element_type=jnp.float32)
    h2 = jnp.maximum(h2 + f["b2t"], 0.0)
    out = jnp.sum(h2 * f["w3t"], axis=0, keepdims=True) + f["b3"]
    return out.T                                               # [B, 1]


if __name__ == "__main__":
    INPUT_DIM, H1, H2 = 16, 32, 16
    key = jax.random.PRNGKey(0)
    kx, kp = jax.random.split(key)

    params = init_params(kp, INPUT_DIM, h1=H1, h2=H2)
    folded = fold_params(params)

    # B=300: two grid steps with a ragged last x tile (megacore + partial-block
    # path). B=64: single full-array block (no tiling at all).
    for B in (300, 64):
        x = jax.random.normal(jax.random.fold_in(kx, B), (B, INPUT_DIM),
                              jnp.float32)
        out = jax.block_until_ready(regression_nn_forward(x, folded))
        assert out.shape == (B, 1)

        # Tight check against a reference with identical numerics (validates the
        # kernel, tiling, ragged-tail handling and BN folding).
        ref_exact = reference_forward_folded(x, folded)
        assert jnp.allclose(out, ref_exact, atol=1e-4, rtol=1e-4), \
            f"B={B}: mismatch vs numerics-matched reference"

        # Looser sanity check against the full-f32 module reference (bf16 MXU
        # inputs introduce ~1e-3 absolute error at these scales).
        ref_f32 = reference_forward(x, params)
        assert jnp.allclose(out, ref_f32, atol=5e-2, rtol=0.0), \
            f"B={B}: kernel drifted too far from f32 module reference"

    print("KERNEL_OK")
</pallas_src>

<mosaic_0001>
module attributes {stable_mosaic.version = 11 : i64} {
  func.func @regression_nn_kernel(%arg0: i32, %arg1: memref<256x16xf32, #tpu.memory_space<vmem>>, %arg2: memref<32x16xbf16, #tpu.memory_space<vmem>>, %arg3: memref<32x1xf32, #tpu.memory_space<vmem>>, %arg4: memref<16x32xbf16, #tpu.memory_space<vmem>>, %arg5: memref<16x1xf32, #tpu.memory_space<vmem>>, %arg6: memref<16x1xf32, #tpu.memory_space<vmem>>, %arg7: memref<1x1xf32, #tpu.memory_space<vmem>>, %arg8: memref<1x256xf32, #tpu.memory_space<vmem>>) attributes {dimension_semantics = [#tpu.dimension_semantics<parallel>], iteration_bounds = array<i64: 2>, scalar_prefetch = 0 : i64, scratch_operands = 0 : i64, tpu.core_type = #tpu.core_type<tc>, window_params = [{transform_indices = @transform_0, window_bounds = array<i64: 256, 16>}, {pipeline_mode = #tpu.pipeline_mode<synchronous>, transform_indices = @transform_1, window_bounds = array<i64: 32, 16>}, {pipeline_mode = #tpu.pipeline_mode<synchronous>, transform_indices = @transform_2, window_bounds = array<i64: 32, 1>}, {pipeline_mode = #tpu.pipeline_mode<synchronous>, transform_indices = @transform_3, window_bounds = array<i64: 16, 32>}, {pipeline_mode = #tpu.pipeline_mode<synchronous>, transform_indices = @transform_4, window_bounds = array<i64: 16, 1>}, {pipeline_mode = #tpu.pipeline_mode<synchronous>, transform_indices = @transform_5, window_bounds = array<i64: 16, 1>}, {pipeline_mode = #tpu.pipeline_mode<synchronous>, transform_indices = @transform_6, window_bounds = array<i64: 1, 1>}, {transform_indices = @transform_7, window_bounds = array<i64: 1, 256>}]} {
    %c0 = arith.constant 0 : index
    %c0_0 = arith.constant 0 : index
    %0 = vector.load %arg1[%c0, %c0_0] : memref<256x16xf32, #tpu.memory_space<vmem>>, vector<256x16xf32>
    %1 = arith.truncf %0 : vector<256x16xf32> to vector<256x16xbf16>
    %c0_1 = arith.constant 0 : index
    %c0_2 = arith.constant 0 : index
    %2 = vector.load %arg2[%c0_1, %c0_2] : memref<32x16xbf16, #tpu.memory_space<vmem>>, vector<32x16xbf16>
    %cst = arith.constant dense<0.000000e+00> : vector<32x256xf32>
    %3 = tpu.matmul %2, %1, %cst {dimension_numbers = #tpu.dot_dimension_numbers<[1], [1], [0], [0], [0, 0, 1, 0], [], []>} : vector<32x16xbf16>, vector<256x16xbf16>, vector<32x256xf32> -> vector<32x256xf32>
    %c0_3 = arith.constant 0 : index
    %c0_4 = arith.constant 0 : index
    %4 = vector.load %arg3[%c0_3, %c0_4] : memref<32x1xf32, #tpu.memory_space<vmem>>, vector<32x1xf32>
    %5 = vector.broadcast %4 : vector<32x1xf32> to vector<32x256xf32>
    %6 = arith.addf %3, %5 : vector<32x256xf32>
    %cst_5 = arith.constant 0.000000e+00 : f32
    %7 = vector.broadcast %cst_5 : f32 to vector<32x256xf32>
    %8 = arith.maximumf %6, %7 : vector<32x256xf32>
    %c0_6 = arith.constant 0 : index
    %c0_7 = arith.constant 0 : index
    %9 = vector.load %arg4[%c0_6, %c0_7] : memref<16x32xbf16, #tpu.memory_space<vmem>>, vector<16x32xbf16>
    %10 = arith.truncf %8 : vector<32x256xf32> to vector<32x256xbf16>
    %cst_8 = arith.constant dense<0.000000e+00> : vector<16x256xf32>
    %11 = tpu.matmul %9, %10, %cst_8 {dimension_numbers = #tpu.dot_dimension_numbers<[1], [0], [0], [1], [0, 0, 1, 1], [], []>} : vector<16x32xbf16>, vector<32x256xbf16>, vector<16x256xf32> -> vector<16x256xf32>
    %c0_9 = arith.constant 0 : index
    %c0_10 = arith.constant 0 : index
    %12 = vector.load %arg5[%c0_9, %c0_10] : memref<16x1xf32, #tpu.memory_space<vmem>>, vector<16x1xf32>
    %13 = vector.broadcast %12 : vector<16x1xf32> to vector<16x256xf32>
    %14 = arith.addf %11, %13 : vector<16x256xf32>
    %cst_11 = arith.constant 0.000000e+00 : f32
    %15 = vector.broadcast %cst_11 : f32 to vector<16x256xf32>
    %16 = arith.maximumf %14, %15 : vector<16x256xf32>
    %c0_12 = arith.constant 0 : index
    %c0_13 = arith.constant 0 : index
    %17 = vector.load %arg6[%c0_12, %c0_13] : memref<16x1xf32, #tpu.memory_space<vmem>>, vector<16x1xf32>
    %18 = vector.broadcast %17 : vector<16x1xf32> to vector<16x256xf32>
    %19 = arith.mulf %16, %18 : vector<16x256xf32>
    %cst_14 = arith.constant dense<0.000000e+00> : vector<256xf32>
    %20 = vector.multi_reduction <add>, %19, %cst_14 [0] : vector<16x256xf32> to vector<256xf32>
    %21 = vector.shape_cast %20 : vector<256xf32> to vector<1x256xf32>
    %c0_15 = arith.constant 0 : index
    %c0_16 = arith.constant 0 : index
    %22 = vector.load %arg7[%c0_15, %c0_16] : memref<1x1xf32, #tpu.memory_space<vmem>>, vector<1x1xf32>
    %23 = vector.broadcast %22 : vector<1x1xf32> to vector<1x256xf32>
    %24 = arith.addf %21, %23 : vector<1x256xf32>
    %c0_17 = arith.constant 0 : index
    %c0_18 = arith.constant 0 : index
    %25 = vector.load %arg8[%c0_17, %c0_18] : memref<1x256xf32, #tpu.memory_space<vmem>>, vector<1x256xf32>
    tpu.vector_store %arg8[%c0_17, %c0_18], %24 {strides = array<i32>} : memref<1x256xf32, #tpu.memory_space<vmem>>, vector<1x256xf32>,
    return
  }
  func.func @transform_0(%arg0: i32) -> (i32, i32) {
    %c0_i32 = arith.constant 0 : i32
    %c0_i32_0 = arith.constant 0 : i32
    return %arg0, %c0_i32 : i32, i32
  }
  func.func @transform_1(%arg0: i32) -> (i32, i32) {
    %c0_i32 = arith.constant 0 : i32
    %c0_i32_0 = arith.constant 0 : i32
    %c0_i32_1 = arith.constant 0 : i32
    return %c0_i32, %c0_i32_0 : i32, i32
  }
  func.func @transform_2(%arg0: i32) -> (i32, i32) {
    %c0_i32 = arith.constant 0 : i32
    %c0_i32_0 = arith.constant 0 : i32
    %c0_i32_1 = arith.constant 0 : i32
    return %c0_i32, %c0_i32_0 : i32, i32
  }
  func.func @transform_3(%arg0: i32) -> (i32, i32) {
    %c0_i32 = arith.constant 0 : i32
    %c0_i32_0 = arith.constant 0 : i32
    %c0_i32_1 = arith.constant 0 : i32
    return %c0_i32, %c0_i32_0 : i32, i32
  }
  func.func @transform_4(%arg0: i32) -> (i32, i32) {
    %c0_i32 = arith.constant 0 : i32
    %c0_i32_0 = arith.constant 0 : i32
    %c0_i32_1 = arith.constant 0 : i32
    return %c0_i32, %c0_i32_0 : i32, i32
  }
  func.func @transform_5(%arg0: i32) -> (i32, i32) {
    %c0_i32 = arith.constant 0 : i32
    %c0_i32_0 = arith.constant 0 : i32
    %c0_i32_1 = arith.constant 0 : i32
    return %c0_i32, %c0_i32_0 : i32, i32
  }
  func.func @transform_6(%arg0: i32) -> (i32, i32) {
    %c0_i32 = arith.constant 0 : i32
    %c0_i32_0 = arith.constant 0 : i32
    %c0_i32_1 = arith.constant 0 : i32
    return %c0_i32, %c0_i32_0 : i32, i32
  }
  func.func @transform_7(%arg0: i32) -> (i32, i32) {
    %c0_i32 = arith.constant 0 : i32
    %c0_i32_0 = arith.constant 0 : i32
    return %c0_i32, %arg0 : i32, i32
  }
}

</mosaic_0001>

<bundles_post_ra>
// kernel: tpu_custom_call.1
= control target key start
LH: loop header
LB: loop body
LE: loop exit
PB: predicated region body
PF: predicated region fallthrough
CT: control target
= control target key end

     0   :  { %s1111_s0 = inlined_call_operand.vmem [shape: f32[300,16], index: 0, kind: input, shape index: {}]   ;;  %s1112_s1 = inlined_call_operand.vmem [shape: bf16[32,16], index: 1, kind: input, shape index: {}]   ;;  %s1113_s2 = inlined_call_operand.vmem [shape: f32[32,1], index: 2, kind: input, shape index: {}]   ;;  %s1114_s3 = inlined_call_operand.vmem [shape: bf16[16,32], index: 3, kind: input, shape index: {}]   ;;  %s1115_s4 = inlined_call_operand.vmem [shape: f32[16,1], index: 4, kind: input, shape index: {}]   ;;  %s1116_s5 = inlined_call_operand.vmem [shape: f32[16,1], index: 5, kind: input, shape index: {}]   ;;  %s1117_s6 = inlined_call_operand.<no memory space> [shape: f32[1,1], index: 6, kind: input, shape index: {}]   ;;  %s1118_s7 = inlined_call_operand.hbm [shape: f32[1,512], index: 7, kind: output, shape index: {}]  }
   0x1   :  { %v12_v0 = vstv %s1117_s6 }
   0x2   :  { %13 = vst [vmem:[#allocation2] sm:$0x1] %v12_v0 }
   0x3   :  { %14 = vsyncpa [#allocation4], 0 }
   0x4   :  { %16 = vsyncpa [#allocation4 + $0x1], 0  ;;  %s921_s26 = smov 0   ;;  %s923_s27 = smov 0  }
   0x5   :  { %s925_s28 = smov 0   ;;  %s927_s29 = smov 0  }
   0x6 LB: > { %s717_s6 = sadd.s32 4294967295, %s873_s29   ;;  %s718_s30 = sadd.s32 4294967294, %s873_s29   ;;  %s873_s29 = sphi %s927_s29, %s1124_s29   ;;  %s869_s28 = sphi %s925_s28, %s1123_s28   ;;  %s865_s27 = sphi %s923_s27, %s1122_s27   ;;  %s861_s26 = sphi %s921_s26, %s1121_s26  }
   0x7   : > { %s944_s8 = sadd.s32 1, %s873_s29   ;;  %s181_s9 = sadd.s32 1, %s869_s28 }
   0x8   : > { %s178_s10 = ssub.s32 %s873_s29, %s944_s8  ;;  %p191_p0 = scmp.ne.s32.totalorder %s869_s28, %s865_s27 }
   0x9   : > { %p179_p1 = scmp.eq.s32.totalorder %s178_s10, 0  ;;  %p192_p2 = scmp.eq.s32.totalorder %s717_s6, 1 }
   0xa   : > { %p197_p3 = scmp.ne.s32.totalorder %s865_s27, %s861_s26  ;;  %p198_p4 = scmp.eq.s32.totalorder %s718_s30, 1 }
   0xb   : > { %s954_s11 = scalar_select %p179_p1, %s869_s28, %s181_s9  }
   0xc   : > { %p956_p5 = por %p192_p2, %p191_p0  ;;  %p960_p6 = por %p198_p4, %p197_p3 }
   0xd   : > { %p721_p7 = scmp.ge.s32.totalorder %s873_s29, 1  ;;  %p251_p8 = scmp.lt.s32.totalorder %s873_s29, 3 }
   0xf   : > { %p252_p9 = pnand %p721_p7, %p251_p8 }
  0x10   : > { %s966_s14 = sshll.u32 (!%p252_p9), %s717_s6, 5  ;;  %v972_v1 = vld [vmem:[%s1112_s1] sm:$0xff] (!%p252_p9)   ;;  %vm389_vm0 = vcmask (!%p252_p9), 130048   ;;  %v875_v3 = vmov (!%p252_p9), 0   ;;  %v357_v4 = vld [vmem:[%s1113_s2 + $0x10] sm:$0xff] (!%p252_p9)  ;;  %v356_v5 = vld [vmem:[%s1113_s2 + $0x8] sm:$0xff] (!%p252_p9) }
  0x11   : > { %255 = sbr.rel (%p252_p9) target bundleno = 586 (0x24a), region = 48  ;;  %p292_p10 = scmp.lt.s32.totalorder (!%p252_p9), %s966_s14, 37  ;;  %v355_v2 = vld [vmem:[%s1113_s2] sm:$0xff] (!%p252_p9)  ;;  %753 = vmatprep.mubr.msk.bf16.mxu0 (!%p252_p9), %vm389_vm0, %v972_v1  ;;  %806 = vset.pattern.permute.xlu0 (!%p252_p9), %v875_v3  ;;  %v358_v6 = vld [vmem:[%s1113_s2 + $0x18] sm:$0xff] (!%p252_p9)  ;;  %v512_v19 = vld [vmem:[%s1115_s4 + $0x8] sm:$0xff] (!%p252_p9)  ;;  %vm528_vm1 = vcmask (!%p252_p9), 261120  }
  0x12   : > { %361 = vperm.xlu0 (!%p252_p9), %806, %v355_v2   ;;  %807 = vset.pattern.permute.xlu1 (!%p252_p9), %v875_v3  ;;  %v511_v16 = vld [vmem:[%s1115_s4] sm:$0xff] (!%p252_p9)  ;;  %v580_v25 = vld [vmem:[%s1116_s5 + $0x8] sm:$0xff] (!%p252_p9)  ;;  %s1069_s18 = scalar_lea.hbm (!%p252_p9), %s1118_s7, %s966_s14  ;;  %s877_s21 = smov (!%p252_p9), [#allocation3]  }
  0x13   : > { %371 = vperm.xlu1 (!%p252_p9), %807, %v357_v4   ;;  %564 = vmatprep.mubr.bf16.mxu1 (!%p252_p9), %v875_v3  ;;  %v579_v22 = vld [vmem:[%s1116_s5] sm:$0xff] (!%p252_p9) }
  0x14   : > { %v609_v28 = vld [vmem:[#allocation2] sm:$0x1] (!%p252_p9) }
  0x16   : > { %366 = vperm.xlu0 (!%p252_p9), %806, %v356_v5   ;;  %v809_v5 = vld [vmem:[%s1112_s1 + $0x8] sm:$0xff] (!%p252_p9)  }
  0x17   : > { %376 = vperm.xlu1 (!%p252_p9), %807, %v358_v6  }
  0x18   : > { %s293_s19 = scalar_select %p292_p10, %s966_s14, 37 }
  0x1a   : > { %s724_s22 = sshll.u32 %s293_s19, 3  ;;  %515 = vperm.xlu0 %806, %v511_v16  }
  0x1b   : > { %s989_s30 = scalar_lea.vmem %s1111_s0, %s724_s22  ;;  %520 = vperm.xlu1 %807, %v512_v19   ;;  %s815_s22 = sshll.u32 %s877_s21, 4  ;;  %s816_s22 = int_to_ptr.vmem [resolvable:$false] %s815_s22 }
  0x1c   : > { %v319_v7 = vld [vmem:[%s989_s30 + $0x80] sm:$0xff]  ;;  %v320_v8 = vld [vmem:[%s989_s30 + $0x88] sm:$0xff]  ;;  %v321_v12 = vld [vmem:[%s989_s30 + $0x90] sm:$0xff]  ;;  %s817_s23 = scalar_lea.vmem %s816_s22, 64 }
  0x1d   : > { %v303_v9 = vld [vmem:[%s989_s30] sm:$0xff]  ;;  %v343_v10 = vpack.c.bf16 %v320_v8, %v319_v7  ;;  %v304_v11 = vld [vmem:[%s989_s30 + $0x8] sm:$0xff]  ;;  %v322_v13 = vld [vmem:[%s989_s30 + $0x98] sm:$0xff] }
  0x1e   : > { %v335_v14 = vpack.c.bf16 %v304_v11, %v303_v9  ;;  %v344_v15 = vpack.c.bf16 %v322_v13, %v321_v12  ;;  %v305_v17 = vld [vmem:[%s989_s30 + $0x10] sm:$0xff]  ;;  %v306_v18 = vld [vmem:[%s989_s30 + $0x18] sm:$0xff]  ;;  %v323_v23 = vld [vmem:[%s989_s30 + $0xa0] sm:$0xff]  ;;  %583 = vperm.xlu0 %806, %v579_v22  }
  0x1f   : > { %757 = vmatprep.subr.msk.bf16.mxu0 %vm389_vm0, %v343_v10  ;;  %v336_v21 = vpack.c.bf16 %v306_v18, %v305_v17  ;;  %v324_v24 = vld [vmem:[%s989_s30 + $0xa8] sm:$0xff]  ;;  %588 = vperm.xlu1 %807, %v580_v25   ;;  %v307_v29 = vld [vmem:[%s989_s30 + $0x20] sm:$0xff]  ;;  %v325_v32 = vld [vmem:[%s989_s30 + $0xb0] sm:$0xff] }
  0x20   : > { %v397_v20 = vsel %vm389_vm0, %v335_v14, 0  ;;  %v345_v27 = vpack.c.bf16 %v324_v24, %v323_v23  ;;  %v308_v30 = vld [vmem:[%s989_s30 + $0x28] sm:$0xff]  ;;  %v326_v33 = vld [vmem:[%s989_s30 + $0xb8] sm:$0xff]  ;;  %v309_v36 = vld [vmem:[%s989_s30 + $0x30] sm:$0xff] }
  0x21   : > { %738 = vmatpush3.bf16.xpose.msra.mxu0 %v397_v20  ;;  %v400_v26 = vsel %vm389_vm0, %v336_v21, 0  ;;  %v337_v31 = vpack.c.bf16 %v308_v30, %v307_v29  ;;  %v346_v35 = vpack.c.bf16 %v326_v33, %v325_v32  ;;  %v310_v37 = vld [vmem:[%s989_s30 + $0x38] sm:$0xff]  ;;  %v327_v39 = vld [vmem:[%s989_s30 + $0xc0] sm:$0xff]  ;;  %v328_v40 = vld [vmem:[%s989_s30 + $0xc8] sm:$0xff] }
  0x22   : > { %758 = vmatprep.subr.msk.bf16.mxu0 %vm389_vm0, %v344_v15  ;;  %612 = vperm.xlu0 %806, %v609_v28   ;;  %v338_v38 = vpack.c.bf16 %v310_v37, %v309_v36  ;;  %v347_v42 = vpack.c.bf16 %v328_v40, %v327_v39  ;;  %v311_v43 = vld [vmem:[%s989_s30 + $0x40] sm:$0xff]  ;;  %v312_v44 = vld [vmem:[%s989_s30 + $0x48] sm:$0xff]  ;;  %v329_v46 = vld [vmem:[%s989_s30 + $0xd0] sm:$0xff] }
  0x23   : > { %v403_v34 = vsel %vm389_vm0, %v337_v31, 0  ;;  %v339_v45 = vpack.c.bf16 %v312_v44, %v311_v43  ;;  %v330_v47 = vld [vmem:[%s989_s30 + $0xd8] sm:$0xff]  ;;  %v313_v50 = vld [vmem:[%s989_s30 + $0x50] sm:$0xff]  ;;  %v331_v53 = vld [vmem:[%s989_s30 + $0xe0] sm:$0xff] }
  0x24   : > { %v406_v41 = vsel %vm389_vm0, %v338_v38, 0  ;;  %v348_v49 = vpack.c.bf16 %v330_v47, %v329_v46  ;;  %v314_v51 = vld [vmem:[%s989_s30 + $0x58] sm:$0xff]  ;;  %v332_v54 = vld [vmem:[%s989_s30 + $0xe8] sm:$0xff]  ;;  %v315_v57 = vld [vmem:[%s989_s30 + $0x60] sm:$0xff] }
  0x25   : > { %v409_v48 = vsel %vm389_vm0, %v339_v45, 0  ;;  %v340_v52 = vpack.c.bf16 %v314_v51, %v313_v50  ;;  %v349_v56 = vpack.c.bf16 %v332_v54, %v331_v53  ;;  %v316_v58 = vld [vmem:[%s989_s30 + $0x68] sm:$0xff]  ;;  %v333_v60 = vld [vmem:[%s989_s30 + $0xf0] sm:$0xff]  ;;  %v334_v61 = vld [vmem:[%s989_s30 + $0xf8] sm:$0xff] }
  0x26   : > { %v341_v59 = vpack.c.bf16 %v316_v58, %v315_v57  ;;  %v350_v63 = vpack.c.bf16 %v334_v61, %v333_v60  ;;  %v317_v0 = vld [vmem:[%s989_s30 + $0x70] sm:$0xff]  ;;  %v318_v2 = vld [vmem:[%s989_s30 + $0x78] sm:$0xff]  ;;  %v810_v37 = vld [vmem:[%s1114_s3] sm:$0xff]   ;;  %v615_v58 = vlaneseq  ;;  %s284_s30 = sand.u32 1, %s865_s27  }
  0x27   : > { %v412_v55 = vsel %vm389_vm0, %v340_v52, 0  ;;  %v342_v3 = vpack.c.bf16 %v318_v2, %v317_v0  ;;  %s722_s9 = sshll.u32 %s284_s30, 1  ;;  %s645_s19 = scalar_lea.sflag [#allocation4], %s284_s30 }
  0x28   : > { %v415_v62 = vsel %vm389_vm0, %v341_v59, 0  ;;  %s286_s10 = scalar_lea.vmem [#allocation3], %s722_s9  ;;  %vm641_vm2 = vcmp.lt.s32.totalorder %v615_v58, 256 }
  0x29   : > { %740 = vmatpush3.bf16.xpose.msra.mxu0 %v400_v26  ;;  %v418_v4 = vsel %vm389_vm0, %v342_v3, 0  ;;  %s659_s15 = sshll.u32 %s286_s10, 4  ;;  %s1071_s15 = int_to_ptr.vmem [resolvable:$true] %s659_s15 }
  0x2a   : > { %759 = vmatprep.subr.msk.bf16.mxu0 %vm389_vm0, %v345_v27  ;;  %s811_s20 = scalar_lea.vmem %s1071_s15, 32  ;;  %p818_p0 = scmp.lt.s32.totalorder %s1071_s15, %s816_s22 }
  0x2b   : > { %p812_p11 = scmp.ne.s32.totalorder %s1071_s15, %s811_s20  ;;  %p819_p1 = scmp.lt.s32.totalorder %s817_s23, %s811_s20 }
  0x2d   : > { %p813_p12 = pnand %p812_p11, %p956_p5  ;;  %p820_p2 = por %p819_p1, %p818_p0 }
  0x2f   : > { %p814_p13 = pneg %p813_p12 }
  0x31   : > { %742 = vmatpush3.bf16.xpose.msra.mxu0 %v403_v34  ;;  %p821_p3 = pnand %p820_p2, %p814_p13 }
  0x32   : > { %760 = vmatprep.subr.msk.bf16.mxu0 %vm389_vm0, %v346_v35 }
  0x39   : > { %744 = vmatpush3.bf16.xpose.msra.mxu0 %v406_v41 }
  0x3a   : > { %761 = vmatprep.subr.msk.bf16.mxu0 %vm389_vm0, %v347_v42 }
  0x41   : > { %746 = vmatpush3.bf16.xpose.msra.mxu0 %v409_v48 }
  0x42   : > { %762 = vmatprep.subr.msk.bf16.mxu0 %vm389_vm0, %v348_v49 }
  0x49   : > { %748 = vmatpush3.bf16.xpose.msra.mxu0 %v412_v55 }
  0x4a   : > { %763 = vmatprep.subr.msk.bf16.mxu0 %vm389_vm0, %v349_v56 }
  0x51   : > { %750 = vmatpush3.bf16.xpose.msra.mxu0 %v415_v62 }
  0x52   : > { %764 = vmatprep.subr.msk.bf16.mxu0 %vm389_vm0, %v350_v63  ;;  %v616_v63 = vshrl.u32 %v615_v58, 7 }
  0x59   : > { %752 = vmatpush3.bf16.xpose.msra.mxu0 %v418_v4  ;;  %v876_v4 = vmov 1966171168  }
  0x60   : > { %754 = vmatmul.mubr.msk.bf16.vlgmr.msra.gmra.mrb[0].mxu0 %vm389_vm0, %v972_v1 }
  0x61   : > { %755 = vmatprep.mubr.msk.bf16.mxu0 %vm389_vm0, %v809_v5 }
  0x68   : > { %756 = vmatmul.mubr.msk.bf16.gmra.mrb[4].mxu0 %vm389_vm0, %v809_v5  ;;  %v625_v5 = vunpack.c.l.s4 %v876_v4 }
  0x91   : > { %v362_v6 = vpop.permute.xlu0 %361 }
  0x92   : > { %v372_v15 = vpop.permute.xlu1 %371 }
  0x95   : > { %v367_v10 = vpop.permute.xlu0 %366 }
  0x96   : > { %v377_v25 = vpop.permute.xlu1 %376 }
  0x99   : > { %v516_v38 = vpop.permute.xlu0 %515 }
  0x9a   : > { %v521_v39 = vpop.permute.xlu1 %520 }
  0x9d   : > { %v584_v51 = vpop.permute.xlu0 %583 }
  0x9e   : > { %v589_v52 = vpop.permute.xlu1 %588 }
 0x133   : > { %v478_v7 = vpop.f32.mrb[0].mxu0 }
 0x134   : > { %v479_v8 = vadd.f32 %v478_v7, %v362_v6  ;;  %v480_v9 = vpop.f32.mrb[1].mxu0  ;;  %v617_v7 = vsub.s32 0, %v616_v63 }
 0x135   : > { %v481_v11 = vadd.f32 %v480_v9, %v362_v6  ;;  %v482_v12 = vpop.f32.mrb[2].mxu0  ;;  %v613_v9 = vpop.permute.xlu0 %612 }
 0x136   : > { %v483_v13 = vadd.f32 %v482_v12, %v367_v10  ;;  %v484_v14 = vpop.f32.mrb[3].mxu0  ;;  %v497_v17 = vmax.f32 %v479_v8, 0.0  ;;  %v626_v12 = vunpack.c.0.s8 %v625_v5 }
 0x137   : > { %v485_v16 = vadd.f32 %v484_v14, %v367_v10  ;;  %v498_v19 = vmax.f32 %v481_v11, 0.0  ;;  %v618_v14 = vrot.slane %v613_v9, %v617_v7 }
 0x138   : > { %v499_v18 = vmax.f32 %v483_v13, 0.0 }
 0x139   : > { %v500_v20 = vmax.f32 %v485_v16, 0.0 }
 0x13a   : > { %v507_v1 = vpack.c.bf16 %v499_v18, %v497_v17  ;;  %v629_v18 = vsub.s32 %v626_v12, %v616_v63 }
 0x13b   : > { %v488_v21 = vpop.f32.mrb[4].mxu0  ;;  %v508_v22 = vpack.c.bf16 %v500_v20, %v498_v19 }
 0x13c   : > { %v489_v23 = vadd.f32 %v488_v21, %v372_v15  ;;  %v490_v24 = vpop.f32.mrb[5].mxu0 }
 0x13d   : > { %v491_v26 = vadd.f32 %v490_v24, %v372_v15  ;;  %v492_v27 = vpop.f32.mrb[6].mxu0  ;;  %532 = vmatprep.subr.bf16.mxu1 %v508_v22 }
 0x13e   : > { %v493_v28 = vadd.f32 %v492_v27, %v377_v25  ;;  %v494_v29 = vpop.f32.mrb[7].mxu0  ;;  %533 = vmatpush1.bf16.msra.mxu1 %v507_v1  ;;  %v501_v31 = vmax.f32 %v489_v23, 0.0 }
 0x13f   : > { %v495_v30 = vadd.f32 %v494_v29, %v377_v25  ;;  %v502_v33 = vmax.f32 %v491_v26, 0.0 }
 0x140   : > { %v503_v32 = vmax.f32 %v493_v28, 0.0 }
 0x141   : > { %v504_v34 = vmax.f32 %v495_v30, 0.0 }
 0x142   : > { %v509_v35 = vpack.c.bf16 %v503_v32, %v501_v31 }
 0x143   : > { %v510_v36 = vpack.c.bf16 %v504_v34, %v502_v33 }
 0x145   : > { %534 = vmatprep.subr.bf16.mxu1 %v510_v36 }
 0x146   : > { %535 = vmatpush1.bf16.msra.mxu1 %v509_v35 }
 0x149   : > { %730 = vmatmul.mubr.msk.bf16.vlgmr.msra.gmra.mrb[0].mxu1 %vm528_vm1, %v810_v37 }
 0x21c   : > { %v566_v40 = vpop.f32.mrb[0].mxu1 }
 0x21d   : > { %v567_v41 = vadd.f32 %v566_v40, %v516_v38  ;;  %v568_v42 = vpop.f32.mrb[1].mxu1 }
 0x21e   : > { %v569_v43 = vadd.f32 %v568_v42, %v516_v38  ;;  %v570_v44 = vpop.f32.mrb[2].mxu1 }
 0x21f   : > { %v575_v45 = vmax.f32 %v567_v41, 0.0  ;;  %v571_v46 = vadd.f32 %v570_v44, %v521_v39  ;;  %v572_v47 = vpop.f32.mrb[3].mxu1 }
 0x220   : > { %v576_v48 = vmax.f32 %v569_v43, 0.0  ;;  %v573_v49 = vadd.f32 %v572_v47, %v521_v39 }
 0x221   : > { %v577_v50 = vmax.f32 %v571_v46, 0.0  ;;  %v591_v54 = vmul.f32 %v584_v51, %v575_v45 }
 0x222   : > { %v578_v53 = vmax.f32 %v573_v49, 0.0  ;;  %v592_v56 = vmul.f32 %v584_v51, %v576_v48 }
 0x223   : > { %v593_v55 = vmul.f32 %v589_v52, %v577_v50 }
 0x224   : > { %v594_v57 = vmul.f32 %v589_v52, %v578_v53 }
 0x225   : > { %v595_v59 = vadd.f32 %v593_v55, %v591_v54 }
 0x226   : > { %v602_v60 = vadd.f32 %v594_v57, %v592_v56 }
 0x227   : > { %v596_v61 = vrot.slane %v595_v59, 4 }
 0x228   : > { %v603_v62 = vrot.slane %v602_v60, 4 }
 0x229   : > { %v597_v0 = vadd.f32 %v596_v61, %v595_v59 }
 0x22a   : > { %v604_v2 = vadd.f32 %v603_v62, %v602_v60 }
 0x22b   : > { %v598_v3 = vrot.slane %v597_v0, 2 }
 0x22c   : > { %v605_v6 = vrot.slane %v604_v2, 2 }
 0x22d   : > { %v599_v8 = vadd.f32 %v598_v3, %v597_v0 }
 0x22e   : > { %v606_v10 = vadd.f32 %v605_v6, %v604_v2 }
 0x22f   : > { %v600_v11 = vrot.slane %v599_v8, 1 }
 0x230   : > { %v607_v13 = vrot.slane %v606_v10, 1 }
 0x231   : > { %v601_v15 = vadd.f32 %v600_v11, %v599_v8 }
 0x232   : > { %v608_v16 = vadd.f32 %v607_v13, %v606_v10 }
 0x233   : > { %v619_v17 = vadd.f32 %v618_v14, %v601_v15 }
 0x234   : > { %v620_v19 = vadd.f32 %v618_v14, %v608_v16 }
 0x236   : > { %v623_v20 = vcombine.low %v619_v17, %v620_v19 }
 0x238   : > { %v630_v1 = vrot.slane %v623_v20, %v629_v18 }
 0x23a   : > { %v637_v21 = vrot.slane %v630_v1, %v629_v18 }
 0x23c   : > { %643 = vst.msk [vmem:[%s286_s10] sm:$0x3] %vm641_vm2, %v637_v21 }
 0x23d   : > { %824 = shalt.err (!%p821_p3)
}
 0x23e   : > { %s825_s14 = scalar_lea.hbm %s1069_s18, 32  ;;  %s829_s6 = scalar_lea.hbm %s1118_s7, 64 }
 0x23f   : > { %p826_p4 = scmp.ne.s32.totalorder %s1069_s18, %s825_s14  ;;  %p830_p9 = scmp.lt.u32.totalorder %s1069_s18, %s1118_s7 }
 0x240   : > { %p831_p10 = scmp.lt.u32.totalorder %s829_s6, %s825_s14  ;;  %p833_p12 = scmp.lt.u32.totalorder %s825_s14, %s1069_s18 }
 0x241   : > { %p827_p7 = pnand %p826_p4, %p956_p5 }
 0x242   : > { %p832_p11 = por %p831_p10, %p830_p9 }
 0x243   : > { %p828_p8 = pneg %p827_p7 }
 0x244   : > { %p834_p13 = por %p833_p12, %p832_p11 }
 0x246   : > { %p835_p0 = pnand %p834_p13, %p828_p8 }
 0x248   : > { %838 = shalt.err (!%p835_p0)
}
 0x249   : > { %765 = dma.vmem_to_hbm [thread:$0]  (%p956_p5), %s1071_s15, 32, %s1069_s18, %s645_s19  }
 0x24a PF: > { %p771_p1 = scmp.ge.s32.totalorder %s873_s29, 2  ;;  %s671_s10 = sand.u32 1, %s861_s26  }
 0x24b   : > { %s672_s16 = scalar_lea.sflag [#allocation4], %s671_s10 }
 0x24c   : > { %p768_p2 = pnand %p771_p1, %p960_p6 }
 0x24e   : > { %856 = dma.done.wait (!%p768_p2), %s672_s16, 32  }
 0x24f   : > { %858 = vsyncadd (!%p768_p2), %s672_s16, 4294967264  ;;  %p19_p3 = scmp.ge.s32.totalorder %s944_s8, 4   ;;  %s1121_s26 = smov %s865_s27 }
 0x250   : > { %s1122_s27 = smov %s869_s28  ;;  %s1123_s28 = smov %s954_s11 }
 0x251   : > { %s1124_s29 = smov %s944_s8  ;;  %21 = sbr.rel (!%p19_p3) target bundleno = 6 (0x6), region = 83 }
 0x258   :  { %677 = vsyncpa [#allocation4], 1 }
 0x259   :  { %679 = vsyncpa [#allocation4 + $0x1], 1 }

</bundles_post_ra>
